<compile_context>
chip_gen: v6e
topology: v6e:2x2x1
jax: 0.10.0
libtpu: 0.0.40
codegen_flags: <defaults>
</compile_context>

<pallas_src>
import functools

import jax
import jax.numpy as jnp
import numpy as np
from jax import lax
from jax.experimental import pallas as pl
from jax.experimental.pallas import tpu as pltpu

d_model = 256
edge_num = 78
padding_idx = 799
k = 20
max_len1 = 3 * edge_num + k      # 254
msp_len = 800

BLOCK_B = 32                     # batch rows per grid step (review: 32-64)


def _round_up(x, m):
    return ((x + m - 1) // m) * m


def _classify1_kernel(bt, g_ref, w2_ref, bias_ref, code_ref, out_ref):
    # g_ref    : (bt, max_len1, edge_num) bf16   gathered rows of T = emb_table @ W1.T
    # w2_ref   : (4, max_len1)            bf16   ll2 weight
    # bias_ref : (4, edge_num)            f32    b1[e]*sum_t W2[c,t] + b2[c]
    # code_ref : (bt, 1, edge_num)        int32  0: no mask, 1: pad row [0,1,1,1], 2: "16" row [0,0,0,1]
    # out_ref  : (bt, 4, edge_num)        f32    log-probs, class on axis 1 (sublanes)
    w2 = w2_ref[...]                                    # hoisted: loop-invariant
    bias = bias_ref[...]
    c_idx = lax.broadcasted_iota(jnp.int32, (4, edge_num), 0)
    c_is3 = c_idx == 3
    c_ge1 = c_idx >= 1

    def _row(i, carry):
        # fused linears:  logits[c, e] = sum_t W2[c, t] * T[src[t], e] + bias[c, e]
        logits = jnp.dot(w2, g_ref[i],
                         preferred_element_type=jnp.float32) + bias       # (4, edge_num) f32
        code = code_ref[i]                                                 # (1, edge_num) int32
        mask = ((code == 2) & c_is3) | ((code == 1) & c_ge1)               # (4, edge_num) bool
        logits = jnp.where(mask, jnp.float32(-1e9), logits)

        # log_softmax over the class axis (axis 0, size 4), f32
        m = jnp.max(logits, axis=0, keepdims=True)
        shifted = logits - m
        lse = jnp.log(jnp.sum(jnp.exp(shifted), axis=0, keepdims=True))
        out_ref[i] = shifted - lse
        return carry

    lax.fori_loop(0, bt, _row, 0)


@jax.jit
def classify1_forward(src, emb_table, w1, b1, w2, b2):
    B = src.shape[0]
    bt = min(BLOCK_B, _round_up(B, 8))
    n_blocks = -(-B // bt)                      # cdiv
    B_pad = n_blocks * bt
    src_p = src
    if B_pad != B:
        pad = jnp.full((B_pad - B, max_len1), padding_idx, src.dtype)
        src_p = jnp.concatenate([src, pad], axis=0)

    # ---- fold ll1 into the embedding table (f32, exact-ish), then gather the small table ----
    table = jnp.dot(emb_table, w1.T)                                    # (800, 78) f32
    g = jnp.take(table.astype(jnp.bfloat16), src_p, axis=0)            # (B_pad, 254, 78) bf16

    # ---- per-edge mask code computed in the wrapper (merges the two int streams of v2) ----
    first = src_p[:, 0:3 * edge_num:3]                                   # (B_pad, 78)
    second = src_p[:, 1:3 * edge_num:3]                                  # (B_pad, 78)
    cond16 = (first == 16) | (second == 16)                              # -> [0,0,0,1] (overrides)
    condpad = first == padding_idx                                       # -> [0,1,1,1]
    code = jnp.where(cond16, 2, jnp.where(condpad, 1, 0)).astype(jnp.int32)
    code = code[:, None, :]                                              # (B_pad, 1, 78)

    w2b = w2.astype(jnp.bfloat16)                                        # (4, 254)
    s2 = jnp.sum(w2, axis=1)                                             # (4,) f32 (exact)
    bias = s2[:, None] * b1[None, :] + b2[:, None]                       # (4, 78) f32

    cost = pl.CostEstimate(
        flops=2 * B_pad * 4 * max_len1 * edge_num,
        transcendentals=B_pad * 5 * edge_num,
        bytes_accessed=(B_pad * max_len1 * edge_num * 2          # g (bf16)
                        + B_pad * edge_num * 4                    # code
                        + B_pad * 4 * edge_num * 4                # out
                        + 4 * max_len1 * 2 + 4 * edge_num * 4))   # w2b + bias

    kernel = functools.partial(_classify1_kernel, bt)
    out_t = pl.pallas_call(
        kernel,
        out_shape=jax.ShapeDtypeStruct((B_pad, 4, edge_num), jnp.float32),
        grid_spec=pltpu.PrefetchScalarGridSpec(
            num_scalar_prefetch=0,
            grid=(n_blocks,),
            in_specs=[
                pl.BlockSpec((bt, max_len1, edge_num), lambda b: (b, 0, 0)),
                pl.BlockSpec((4, max_len1), lambda b: (0, 0)),
                pl.BlockSpec((4, edge_num), lambda b: (0, 0)),
                pl.BlockSpec((bt, 1, edge_num), lambda b: (b, 0, 0)),
            ],
            out_specs=pl.BlockSpec((bt, 4, edge_num), lambda b: (b, 0, 0)),
        ),
        compiler_params=pltpu.CompilerParams(
            dimension_semantics=("parallel",)),
        cost_estimate=cost,
    )(g, w2b, bias, code)

    out_t = out_t[:B]                          # (B, 4, 78)
    return jnp.transpose(out_t, (0, 2, 1))     # (B, 78, 4) — matches PyTorch output


def _build_pad_mask(src):
    """Vectorized get_pad_mask1 (second condition overrides the first) — ref only."""
    first = src[:, 0::3][:, :edge_num]
    second = src[:, 1::3][:, :edge_num]
    cond_pad = first == padding_idx
    cond_16 = (first == 16) | (second == 16)
    pat_pad = jnp.array([0.0, 1.0, 1.0, 1.0], jnp.float32)
    pat_16 = jnp.array([0.0, 0.0, 0.0, 1.0], jnp.float32)
    mask = jnp.zeros((src.shape[0], edge_num, 4), jnp.float32)
    mask = jnp.where(cond_pad[:, :, None], pat_pad, mask)
    mask = jnp.where(cond_16[:, :, None], pat_16, mask)
    return mask


def classify1_ref(src, emb_table, w1, b1, w2, b2):
    """Pure-JAX f32 reference mirroring the PyTorch forward (unfused)."""
    emb = jnp.take(emb_table, src, axis=0)
    h = emb @ w1.T + b1                      # (B, 254, 78)
    h = jnp.transpose(h, (0, 2, 1))          # (B, 78, 254)
    h2 = h @ w2.T + b2                       # (B, 78, 4)
    mask = _build_pad_mask(src) > 0.5
    h2 = jnp.where(mask, -1e9, h2)
    return jax.nn.log_softmax(h2, axis=2)


def init_params(key):
    """Deterministic synthetic parameters matching the PyTorch module shapes."""
    k_emb, k_w1, k_b1, k_w2, k_b2 = jax.random.split(key, 5)
    emb_table = jax.random.normal(k_emb, (msp_len, d_model), jnp.float32) * 0.02
    emb_table = emb_table.at[padding_idx].set(0.0)     # nn.Embedding padding_idx row
    lim1 = 1.0 / (d_model ** 0.5)
    w1 = jax.random.uniform(k_w1, (edge_num, d_model), jnp.float32, -lim1, lim1)
    b1 = jax.random.uniform(k_b1, (edge_num,), jnp.float32, -lim1, lim1)
    lim2 = 1.0 / (max_len1 ** 0.5)
    w2 = jax.random.uniform(k_w2, (4, max_len1), jnp.float32, -lim2, lim2)
    b2 = jax.random.uniform(k_b2, (4,), jnp.float32, -lim2, lim2)
    return emb_table, w1, b1, w2, b2


if __name__ == "__main__":
    key = jax.random.PRNGKey(0)
    k_params, k_src = jax.random.split(key)
    params = init_params(k_params)

    B = 40   # not a multiple of BLOCK_B -> exercises 2 grid blocks AND the padding path
    src = jax.random.randint(k_src, (B, max_len1), 0, msp_len, dtype=jnp.int32)
    # Exercise all mask branches deterministically (first block and second block).
    src = src.at[0, 0].set(padding_idx)   # -> mask row [0,1,1,1]
    src = src.at[0, 3].set(16)            # -> mask row [0,0,0,1]
    src = src.at[1, 7].set(16)            # src[1, 3*2+1] == 16 -> [0,0,0,1]
    src = src.at[2, 6].set(padding_idx)   # pad + 16 on same edge:
    src = src.at[2, 7].set(16)            #   second condition overrides -> [0,0,0,1]
    src = src.at[35, 0].set(padding_idx)  # second grid block: pad row
    src = src.at[35, 4].set(16)           # second grid block: "16" row

    out = classify1_forward(src, *params)
    out = jax.block_until_ready(out)

    ref = classify1_ref(src, *params)
    assert out.shape == (B, edge_num, 4)
    np.testing.assert_allclose(np.asarray(out), np.asarray(ref), rtol=1e-3, atol=1e-3)
    print("KERNEL_OK")
</pallas_src>

<mosaic_0001>
module attributes {stable_mosaic.version = 11 : i64} {
  func.func @_classify1_kernel(%arg0: i32, %arg1: memref<32x254x78xbf16, #tpu.memory_space<vmem>>, %arg2: memref<4x254xbf16, #tpu.memory_space<vmem>>, %arg3: memref<4x78xf32, #tpu.memory_space<vmem>>, %arg4: memref<32x1x78xi32, #tpu.memory_space<vmem>>, %arg5: memref<32x4x78xf32, #tpu.memory_space<vmem>>) attributes {dimension_semantics = [#tpu.dimension_semantics<parallel>], iteration_bounds = array<i64: 2>, scalar_prefetch = 0 : i64, scratch_operands = 0 : i64, tpu.core_type = #tpu.core_type<tc>, window_params = [{transform_indices = @transform_0, window_bounds = array<i64: 32, 254, 78>}, {pipeline_mode = #tpu.pipeline_mode<synchronous>, transform_indices = @transform_1, window_bounds = array<i64: 4, 254>}, {pipeline_mode = #tpu.pipeline_mode<synchronous>, transform_indices = @transform_2, window_bounds = array<i64: 4, 78>}, {transform_indices = @transform_3, window_bounds = array<i64: 32, 1, 78>}, {transform_indices = @transform_4, window_bounds = array<i64: 32, 4, 78>}]} {
    %c0 = arith.constant 0 : index
    %c0_0 = arith.constant 0 : index
    %0 = vector.load %arg2[%c0, %c0_0] : memref<4x254xbf16, #tpu.memory_space<vmem>>, vector<4x254xbf16>
    %c0_1 = arith.constant 0 : index
    %c0_2 = arith.constant 0 : index
    %1 = vector.load %arg3[%c0_1, %c0_2] : memref<4x78xf32, #tpu.memory_space<vmem>>, vector<4x78xf32>
    %2 = tpu.iota {dimensions = array<i32: 0>} : vector<4x78xi32>
    %c3_i32 = arith.constant 3 : i32
    %3 = vector.broadcast %c3_i32 : i32 to vector<4x78xi32>
    %4 = arith.cmpi eq, %2, %3 : vector<4x78xi32>
    %c1_i32 = arith.constant 1 : i32
    %5 = vector.broadcast %c1_i32 : i32 to vector<4x78xi32>
    %6 = arith.cmpi sge, %2, %5 : vector<4x78xi32>
    %c0_i32 = arith.constant 0 : i32
    %c32_i32 = arith.constant 32 : i32
    %7 = arith.addi %c0_i32, %c32_i32 : i32
    %c1_i32_3 = arith.constant 1 : i32
    scf.for %arg6 = %c0_i32 to %7 step %c1_i32_3  : i32 {
      %8 = arith.index_cast %arg6 : i32 to index
      %c0_5 = arith.constant 0 : index
      %c0_6 = arith.constant 0 : index
      %9 = vector.load %arg1[%8, %c0_5, %c0_6] : memref<32x254x78xbf16, #tpu.memory_space<vmem>>, vector<1x254x78xbf16>
      %10 = vector.shape_cast %9 : vector<1x254x78xbf16> to vector<254x78xbf16>
      %cst = arith.constant dense<0.000000e+00> : vector<4x78xf32>
      %11 = tpu.matmul %0, %10, %cst {dimension_numbers = #tpu.dot_dimension_numbers<[1], [0], [0], [1], [0, 0, 1, 1], [], []>} : vector<4x254xbf16>, vector<254x78xbf16>, vector<4x78xf32> -> vector<4x78xf32>
      %12 = arith.addf %11, %1 : vector<4x78xf32>
      %13 = arith.index_cast %arg6 : i32 to index
      %c0_7 = arith.constant 0 : index
      %c0_8 = arith.constant 0 : index
      %14 = vector.load %arg4[%13, %c0_7, %c0_8] : memref<32x1x78xi32, #tpu.memory_space<vmem>>, vector<1x1x78xi32>
      %15 = vector.shape_cast %14 : vector<1x1x78xi32> to vector<1x78xi32>
      %c2_i32 = arith.constant 2 : i32
      %16 = vector.broadcast %c2_i32 : i32 to vector<1x78xi32>
      %17 = arith.cmpi eq, %15, %16 : vector<1x78xi32>
      %18 = vector.broadcast %17 : vector<1x78xi1> to vector<4x78xi1>
      %19 = arith.andi %18, %4 : vector<4x78xi1>
      %c1_i32_9 = arith.constant 1 : i32
      %20 = vector.broadcast %c1_i32_9 : i32 to vector<1x78xi32>
      %21 = arith.cmpi eq, %15, %20 : vector<1x78xi32>
      %22 = vector.broadcast %21 : vector<1x78xi1> to vector<4x78xi1>
      %23 = arith.andi %22, %6 : vector<4x78xi1>
      %24 = arith.ori %19, %23 : vector<4x78xi1>
      %cst_10 = arith.constant -1.000000e+09 : f32
      %25 = vector.broadcast %cst_10 : f32 to vector<4x78xf32>
      %26 = arith.select %24, %25, %12 : vector<4x78xi1>, vector<4x78xf32>
      %cst_11 = arith.constant dense<0xFF800000> : vector<78xf32>
      %27 = vector.multi_reduction <maximumf>, %26, %cst_11 [0] : vector<4x78xf32> to vector<78xf32>
      %28 = vector.shape_cast %27 : vector<78xf32> to vector<1x78xf32>
      %29 = vector.broadcast %28 : vector<1x78xf32> to vector<4x78xf32>
      %30 = arith.subf %26, %29 : vector<4x78xf32>
      %31 = math.exp %30 : vector<4x78xf32>
      %cst_12 = arith.constant dense<0.000000e+00> : vector<78xf32>
      %32 = vector.multi_reduction <add>, %31, %cst_12 [0] : vector<4x78xf32> to vector<78xf32>
      %33 = vector.shape_cast %32 : vector<78xf32> to vector<1x78xf32>
      %34 = math.log %33 : vector<1x78xf32>
      %35 = vector.broadcast %34 : vector<1x78xf32> to vector<4x78xf32>
      %36 = arith.subf %30, %35 : vector<4x78xf32>
      %37 = arith.index_cast %arg6 : i32 to index
      %c0_13 = arith.constant 0 : index
      %c0_14 = arith.constant 0 : index
      %38 = vector.load %arg5[%37, %c0_13, %c0_14] : memref<32x4x78xf32, #tpu.memory_space<vmem>>, vector<1x4x78xf32>
      %39 = vector.shape_cast %38 : vector<1x4x78xf32> to vector<4x78xf32>
      %40 = vector.shape_cast %36 : vector<4x78xf32> to vector<1x4x78xf32>
      tpu.vector_store %arg5[%37, %c0_13, %c0_14], %40 {strides = array<i32>} : memref<32x4x78xf32, #tpu.memory_space<vmem>>, vector<1x4x78xf32>,
    }
    %c32_i32_4 = arith.constant 32 : i32
    return
  }
  func.func @transform_0(%arg0: i32) -> (i32, i32, i32) {
    %c0_i32 = arith.constant 0 : i32
    %c0_i32_0 = arith.constant 0 : i32
    %c0_i32_1 = arith.constant 0 : i32
    return %arg0, %c0_i32, %c0_i32_0 : i32, i32, i32
  }
  func.func @transform_1(%arg0: i32) -> (i32, i32) {
    %c0_i32 = arith.constant 0 : i32
    %c0_i32_0 = arith.constant 0 : i32
    %c0_i32_1 = arith.constant 0 : i32
    return %c0_i32, %c0_i32_0 : i32, i32
  }
  func.func @transform_2(%arg0: i32) -> (i32, i32) {
    %c0_i32 = arith.constant 0 : i32
    %c0_i32_0 = arith.constant 0 : i32
    %c0_i32_1 = arith.constant 0 : i32
    return %c0_i32, %c0_i32_0 : i32, i32
  }
  func.func @transform_3(%arg0: i32) -> (i32, i32, i32) {
    %c0_i32 = arith.constant 0 : i32
    %c0_i32_0 = arith.constant 0 : i32
    %c0_i32_1 = arith.constant 0 : i32
    return %arg0, %c0_i32, %c0_i32_0 : i32, i32, i32
  }
  func.func @transform_4(%arg0: i32) -> (i32, i32, i32) {
    %c0_i32 = arith.constant 0 : i32
    %c0_i32_0 = arith.constant 0 : i32
    %c0_i32_1 = arith.constant 0 : i32
    return %arg0, %c0_i32, %c0_i32_0 : i32, i32, i32
  }
}

</mosaic_0001>

<bundles_post_ra>
// kernel: classify1_forward.1
= control target key start
LH: loop header
LB: loop body
LE: loop exit
PB: predicated region body
PF: predicated region fallthrough
CT: control target
= control target key end

     0   :  { %s681_s15 = smov 0   ;;  %s772_s0 = inlined_call_operand.vmem [shape: bf16[64,254,78], index: 0, kind: input, shape index: {}]   ;;  %s773_s1 = inlined_call_operand.vmem [shape: bf16[4,254], index: 1, kind: input, shape index: {}]   ;;  %s774_s2 = inlined_call_operand.vmem [shape: f32[4,78], index: 2, kind: input, shape index: {}]   ;;  %s775_s3 = inlined_call_operand.vmem [shape: s32[64,1,78], index: 3, kind: input, shape index: {}]   ;;  %s776_s4 = inlined_call_operand.vmem [shape: f32[64,4,78], index: 4, kind: output, shape index: {}]  }
   0x1 LB: > { %s543_s16 = sadd.s32 4294967295, %s649_s15   ;;  %p547_p0 = scmp.ge.s32.totalorder %s649_s15, 1  ;;  %s649_s15 = sphi %s681_s15, %s14_s15  }
   0x2   : > { %p174_p1 = scmp.lt.s32.totalorder %s649_s15, 3 }
   0x4   : > { %p175_p2 = pnand %p547_p0, %p174_p1 }
   0x5   : > { %s548_s17 = sshll.u32 (!%p175_p2), %s543_s16, 5  ;;  %s721_s7 = smov (!%p175_p2), 0  }
   0x6   : > { %178 = sbr.rel (%p175_p2) target bundleno = 314 (0x13a), region = 36  ;;  %p206_p3 = scmp.lt.s32.totalorder (!%p175_p2), %s548_s17, 63 }
   0xb   : > { %v692_v0 = vld.sshfl [vmem:[%s773_s1] sm:$0x33 pattern:$0x76325410]  ;;  %v226_v1 = vlaneseq  ;;  %s778_s17 = smov (!%p206_p3, %s548_s17), 63 }
   0xc   : > { %v697_v2 = vld [vmem:[%s774_s2] sm:$0xf]  ;;  %s577_s22 = sshll.u32 %s778_s17, 7  ;;  %s215_s25 = scalar_lea.vmem %s775_s3, %s778_s17 }
   0xd   : > { %v699_v3 = vshrl.u32 %v226_v1, 7  ;;  %s713_s28 = scalar_lea.vmem %s772_s0, %s577_s22  ;;  %s553_s29 = sshll.u32 %s778_s17, 2 }
   0xe   : > { %s719_s6 = scalar_lea.vmem %s776_s4, %s553_s29 }
   0xf   : > { %vm228_vm0 = vcmp.eq.s32.totalorder %v699_v3, 3  ;;  %vm229_vm1 = vcmp.ge.s32.totalorder %v699_v3, 1 }
  0x10 LB: >> { %v279_v4 = vcombine.high %v692_v0, %v692_v0  ;;  %vm376_vm2 = vcmask 1031168   ;;  %s578_s8 = sshll.u32 %s653_s7, 7  ;;  %vm380_vm3 = vcmask 1046528   ;;  %s424_s12 = scalar_lea.vmem %s215_s25, %s653_s7  ;;  %v430_v22 = vsub.s32 0, %v699_v3  ;;  %s653_s7 = sphi %s721_s7, %s235_s7  }
  0x11   : >> { %s730_s9 = scalar_lea.vmem %s713_s28, %s578_s8  ;;  %v425_v21 = vld [vmem:[%s424_s12] sm:$0x1]  ;;  %v655_v23 = vmov 0   ;;  %vm444_vm11 = vcmask 633856   ;;  %s574_s13 = sshll.u32 %s653_s7, 2 }
  0x12   : >> { %573 = vmatprep.mubr.msk.bf16.mxu0 %vm376_vm2, %v279_v4  ;;  %v619_v5 = vld [vmem:[%s730_s9 + $0x78] sm:$0x7f]   ;;  %v621_v7 = vld [vmem:[%s730_s9 + $0x70] sm:$0xff]   ;;  %v623_v9 = vld [vmem:[%s730_s9 + $0x68] sm:$0xff]   ;;  %vm426_vm4 = vcmp.eq.s32.totalorder %v425_v21, 2  ;;  %vm434_vm5 = vcmp.eq.s32.totalorder %v425_v21, 1  ;;  %s466_s14 = scalar_lea.vmem %s719_s6, %s574_s13 }
  0x13   : >> { %v620_v6 = vld [vmem:[%s730_s9 + $0x38] sm:$0xff]   ;;  %601 = vmatprep.subr.msk.bf16.mxu0 %vm380_vm3, %v619_v5  ;;  %v622_v8 = vld [vmem:[%s730_s9 + $0x30] sm:$0xff]   ;;  %v624_v10 = vld [vmem:[%s730_s9 + $0x28] sm:$0xff]   ;;  %v427_v24 = vsel %vm426_vm4, 1, %v655_v23  ;;  %v435_v25 = vsel %vm434_vm5, 1, %v655_v23  ;;  %s235_s7 = sadd.s32 1, %s653_s7  }
  0x14   : >> { %580 = vmatpush3.bf16.msra.mxu0 %v620_v6  ;;  %v625_v11 = vld [vmem:[%s730_s9 + $0x60] sm:$0xff]   ;;  %v627_v13 = vld [vmem:[%s730_s9 + $0x58] sm:$0xff]   ;;  %v629_v15 = vld [vmem:[%s730_s9 + $0x50] sm:$0xff]   ;;  %v431_v26 = vrot.slane %v427_v24, %v430_v22  ;;  %v439_v27 = vrot.slane %v435_v25, %v430_v22  ;;  %p232_p4 = scmp.ge.s32.totalorder %s235_s7, 32  }
  0x15   : >> { %581 = vmatprep.subr.bf16.mxu0 %v621_v7  ;;  %v626_v12 = vld [vmem:[%s730_s9 + $0x20] sm:$0xff]   ;;  %v628_v14 = vld [vmem:[%s730_s9 + $0x18] sm:$0xff]   ;;  %v630_v16 = vld [vmem:[%s730_s9 + $0x10] sm:$0xff]  }
  0x16   : >> { %v631_v17 = vld [vmem:[%s730_s9 + $0x48] sm:$0xff]   ;;  %v633_v19 = vld [vmem:[%s730_s9 + $0x40] sm:$0xff]   ;;  %vm432_vm6 = vcmp.eq.s32.totalorder %v431_v26, 1  ;;  %vm440_vm7 = vcmp.eq.s32.totalorder %v439_v27, 1 }
  0x17   : >> { %v632_v18 = vld [vmem:[%s730_s9 + $0x8] sm:$0xff]   ;;  %v634_v20 = vld [vmem:[%s730_s9] sm:$0xff]   ;;  %vm433_vm8 = vmand %vm432_vm6, %vm228_vm0 }
  0x18   : >> { %582 = vmatpush3.bf16.msra.mxu0 %v622_v8  ;;  %vm441_vm9 = vmand %vm440_vm7, %vm229_vm1 }
  0x19   : >> { %583 = vmatprep.subr.bf16.mxu0 %v623_v9  ;;  %vm442_vm10 = vmor %vm433_vm8, %vm441_vm9 }
  0x1c   : >> { %584 = vmatpush3.bf16.msra.mxu0 %v624_v10 }
  0x1d   : >> { %585 = vmatprep.subr.bf16.mxu0 %v625_v11 }
  0x20   : >> { %586 = vmatpush3.bf16.msra.mxu0 %v626_v12 }
  0x21   : >> { %587 = vmatprep.subr.bf16.mxu0 %v627_v13 }
  0x24   : >> { %588 = vmatpush3.bf16.msra.mxu0 %v628_v14 }
  0x25   : >> { %589 = vmatprep.subr.bf16.mxu0 %v629_v15 }
  0x28   : >> { %590 = vmatpush3.bf16.msra.mxu0 %v630_v16 }
  0x29   : >> { %591 = vmatprep.subr.bf16.mxu0 %v631_v17 }
  0x2c   : >> { %592 = vmatpush3.bf16.msra.mxu0 %v632_v18 }
  0x2d   : >> { %593 = vmatprep.subr.bf16.mxu0 %v633_v19 }
  0x30   : >> { %594 = vmatpush3.bf16.msra.mxu0 %v634_v20 }
  0x33   : >> { %417 = vmatmul.mubr.bf16.vlgmr.msra.gmra.mxu0 %v692_v0 }
  0xf3   : >> { %v595_v28 = vpop.f32.mrf.mxu0 }
  0xf5   : >> { %v596_v29 = vpop.f32.mrf.mxu0 }
  0xf6   : >> { %v597_v30 = vadd.f32 %v596_v29, %v595_v28 }
  0xf7   : >> { %v598_v31 = vpop.f32.mrf.mxu0 }
  0xf8   : >> { %v419_v32 = vadd.f32 %v597_v30, %v697_v2 }
  0xf9   : >> { %v599_v33 = vpop.f32.mrf.mxu0 }
  0xfa   : >> { %v443_v34 = vsel %vm442_vm10, -1e+09, %v419_v32 }
  0xfb   : >> { %v445_v35 = vsel %vm444_vm11, %v443_v34, -inf }
  0xfc   : >> { %v446_v36 = vrot.slane %v445_v35, 4 }
  0xfe   : >> { %v447_v37 = vmax.f32 %v445_v35, %v446_v36 }
 0x100   : >> { %v448_v38 = vrot.slane %v447_v37, 2 }
 0x102   : >> { %v449_v39 = vmax.f32 %v447_v37, %v448_v38 }
 0x104   : >> { %v450_v40 = vrot.slane %v449_v39, 1 }
 0x106   : >> { %v451_v41 = vmax.f32 %v449_v39, %v450_v40 }
 0x108   : >> { %v452_v42 = vsub.f32 %v443_v34, %v451_v41 }
 0x10a   : >> { %v453_v43 = vmul.f32 1.442695, %v452_v42 }
 0x10c   : >> { %635 = vpow2.f32 %v453_v43 }
 0x119   : >> { %v636_v44 = vpop.eup %635 }
 0x11a   : >> { %v455_v45 = vsel %vm444_vm11, %v636_v44, 0.0 }
 0x11b   : >> { %v456_v46 = vrot.slane %v455_v45, 4 }
 0x11d   : >> { %v457_v47 = vadd.f32 %v456_v46, %v455_v45 }
 0x11f   : >> { %v458_v48 = vrot.slane %v457_v47, 2 }
 0x121   : >> { %v459_v49 = vadd.f32 %v458_v48, %v457_v47 }
 0x123   : >> { %v460_v50 = vrot.slane %v459_v49, 1 }
 0x125   : >> { %v461_v51 = vadd.f32 %v460_v50, %v459_v49 }
 0x127   : >> { %637 = vlog2.f32 %v461_v51 }
 0x134   : >> { %v638_v52 = vpop.eup %637 }
 0x135   : >> { %v463_v53 = vmul.f32 0.6931472, %v638_v52  ;;  %234 = sbr.rel (!%p232_p4) target bundleno = 16 (0x10), region = 79 }
 0x137   : >> { %v464_v54 = vsub.f32 %v452_v42, %v463_v53 }
 0x139   : >> { %467 = vst.msk [vmem:[%s466_s14] sm:$0xf] %vm444_vm11, %v464_v54 }
 0x13a PF: > { %s14_s15 = sadd.s32 1, %s649_s15  }
 0x13b   : > { %p11_p5 = scmp.ge.s32.totalorder %s14_s15, 4  }
 0x13d   :  { %13 = sbr.rel (!%p11_p5) target bundleno = 1 (0x1), region = 90 }

</bundles_post_ra>
